<compile_context>
chip_gen: v5e
topology: v5e:2x2
jax: 0.10.0
libtpu: 0.0.40
codegen_flags: <defaults>
</compile_context>

<pallas_src>
import jax
import jax.numpy as jnp
from jax.experimental import pallas as pl
from jax.experimental.pallas import tpu as pltpu


def _sigmoid_direct_kernel(x_ref, y_ref, logdet_ref):
    """y = sigmoid(x); logdet = sum_d log(s*(1-s)) via a stable shared form."""
    x = x_ref[...].astype(jnp.float32)
    neg_abs = -jnp.abs(x)
    t = jnp.exp(neg_abs)                  # exp(-|x|), shared by y & logdet
    denom = 1.0 + t
    # Exact division (not approx reciprocal): keeps y within tight tolerance;
    # the kernel is memory-bound so this costs nothing on the critical path.
    s = jnp.where(x >= 0.0, 1.0 / denom, t / denom)   # sigmoid(x), stable both tails
    y_ref[...] = s.astype(y_ref.dtype)
    # log(s*(1-s)) = -|x| - 2*log1p(exp(-|x|)); finite for all x (no -inf
    # underflow at large |x| unlike log(s*(1-s)) computed directly).
    logdet_elem = neg_abs - 2.0 * jnp.log1p(t)
    logdet_ref[...] = jnp.sum(logdet_elem, axis=-1, keepdims=True).astype(
        logdet_ref.dtype)


def _sigmoid_inverse_kernel(x_ref, y_ref, logdet_ref):
    """y = logit(x); logdet = -sum_d log(x - x^2), sharing the two logs."""
    x = x_ref[...].astype(jnp.float32)
    lx = jnp.log(x)
    l1mx = jnp.log1p(-x)                  # log(1-x), accurate near x -> 1
    y_ref[...] = (lx - l1mx).astype(y_ref.dtype)
    logdet_ref[...] = (-jnp.sum(lx + l1mx, axis=-1, keepdims=True)).astype(
        logdet_ref.dtype)


def _choose_block_rows(B, D, elem_bytes, target_block_bytes=4 << 20):
    """Pick a row-block size giving ~4 MiB tiles (HBM-roofline friendly).

    Rows are aligned to the sublane packing (8 rows for 4-byte dtypes, 16 for
    2-byte dtypes such as bf16). ~4 MiB in + ~4 MiB out, double buffered, fits
    the v7x 32 MiB default scoped-VMEM limit. We keep >= 2 grid steps whenever
    B allows so the "parallel" grid axis can be sharded across v7x's 2 TCs.
    """
    row_align = 8 if elem_bytes >= 4 else 16
    row_bytes = max(1, D * elem_bytes)
    rows = max(row_align,
               (target_block_bytes // row_bytes) // row_align * row_align)
    if rows >= B:
        if B > 2 * row_align:
            half = (B + 1) // 2
            rows = ((half + row_align - 1) // row_align) * row_align
            if rows >= B:
                rows = B          # single full-extent block
        else:
            rows = B              # single full-extent block (small B)
    return rows


def sigmoid_flow(inputs, cond_inputs=None, mode="direct", block_rows=None):
    """Pallas equivalent of Sigmoid.forward. `inputs` is (B, D).

    Returns (y, logdet): y has inputs.dtype, logdet is float32 of shape (B, 1).
    """
    del cond_inputs  # unused, mirrors the PyTorch signature
    B, D = inputs.shape
    elem_bytes = jnp.dtype(inputs.dtype).itemsize
    if block_rows is None:
        block_rows = _choose_block_rows(B, D, elem_bytes)
    kernel = _sigmoid_direct_kernel if mode == "direct" else _sigmoid_inverse_kernel

    grid = (pl.cdiv(B, block_rows),)  # remainder rows handled by edge masking
    y, logdet = pl.pallas_call(
        kernel,
        grid=grid,
        in_specs=[pl.BlockSpec((block_rows, D), lambda i: (i, 0))],
        out_specs=[
            pl.BlockSpec((block_rows, D), lambda i: (i, 0)),
            pl.BlockSpec((block_rows, 1), lambda i: (i, 0)),
        ],
        out_shape=(
            jax.ShapeDtypeStruct((B, D), inputs.dtype),
            jax.ShapeDtypeStruct((B, 1), jnp.float32),  # keep reduction in f32
        ),
        compiler_params=pltpu.CompilerParams(
            dimension_semantics=("parallel",),
        ),
    )(inputs)
    return y, logdet


if __name__ == "__main__":
    D = 32

    # --- direct mode: arbitrary real inputs; B=64 gives a 2-step parallel grid ---
    B = 64
    x = jax.random.normal(jax.random.PRNGKey(0), (B, D), dtype=jnp.float32)
    y, logdet = jax.block_until_ready(sigmoid_flow(x, mode="direct"))

    s_ref = jax.nn.sigmoid(x)
    ld_ref = jnp.sum(jnp.log(s_ref * (1 - s_ref)), axis=-1, keepdims=True)
    assert jnp.allclose(y, s_ref, atol=1e-5), "direct y mismatch"
    assert jnp.allclose(logdet, ld_ref, rtol=1e-4, atol=1e-2), "direct logdet mismatch"

    # large-|x| stability: naive log(s*(1-s)) underflows to -inf, kernel stays finite
    x_big = jnp.full((8, D), 120.0, dtype=jnp.float32)
    _, ld_big = jax.block_until_ready(sigmoid_flow(x_big, mode="direct"))
    assert jnp.all(jnp.isfinite(ld_big)), "direct logdet not finite at large |x|"

    # --- inverse mode: inputs in (0, 1); B=20 exercises the masked remainder block ---
    Bi = 20
    u = jax.random.uniform(jax.random.PRNGKey(1), (Bi, D),
                           dtype=jnp.float32, minval=0.05, maxval=0.95)
    yi, ldi = jax.block_until_ready(sigmoid_flow(u, mode="inverse"))
    yi_ref = jnp.log(u / (1 - u))
    ldi_ref = -jnp.sum(jnp.log(u - u * u), axis=-1, keepdims=True)
    assert jnp.allclose(yi, yi_ref, atol=1e-4), "inverse y mismatch"
    assert jnp.allclose(ldi, ldi_ref, rtol=1e-4, atol=1e-2), "inverse logdet mismatch"

    print("KERNEL_OK")
</pallas_src>

<mosaic_0001>
module attributes {stable_mosaic.version = 11 : i64} {
  func.func @_sigmoid_direct_kernel(%arg0: i32, %arg1: memref<32x32xf32, #tpu.memory_space<vmem>>, %arg2: memref<32x32xf32, #tpu.memory_space<vmem>>, %arg3: memref<32x1xf32, #tpu.memory_space<vmem>>) attributes {dimension_semantics = [#tpu.dimension_semantics<parallel>], iteration_bounds = array<i64: 2>, scalar_prefetch = 0 : i64, scratch_operands = 0 : i64, tpu.core_type = #tpu.core_type<tc>, window_params = [{transform_indices = @transform_0, window_bounds = array<i64: 32, 32>}, {transform_indices = @transform_1, window_bounds = array<i64: 32, 32>}, {transform_indices = @transform_2, window_bounds = array<i64: 32, 1>}]} {
    %c0 = arith.constant 0 : index
    %c0_0 = arith.constant 0 : index
    %0 = vector.load %arg1[%c0, %c0_0] : memref<32x32xf32, #tpu.memory_space<vmem>>, vector<32x32xf32>
    %1 = math.absf %0 : vector<32x32xf32>
    %cst = arith.constant 0.000000e+00 : f32
    %2 = vector.broadcast %cst : f32 to vector<32x32xf32>
    %3 = arith.subf %2, %1 : vector<32x32xf32>
    %4 = math.exp %3 : vector<32x32xf32>
    %cst_1 = arith.constant 1.000000e+00 : f32
    %5 = vector.broadcast %cst_1 : f32 to vector<32x32xf32>
    %6 = arith.addf %5, %4 : vector<32x32xf32>
    %cst_2 = arith.constant 0.000000e+00 : f32
    %7 = vector.broadcast %cst_2 : f32 to vector<32x32xf32>
    %8 = arith.cmpf oge, %0, %7 : vector<32x32xf32>
    %cst_3 = arith.constant 1.000000e+00 : f32
    %9 = vector.broadcast %cst_3 : f32 to vector<32x32xf32>
    %10 = arith.divf %9, %6 : vector<32x32xf32>
    %11 = arith.divf %4, %6 : vector<32x32xf32>
    %12 = arith.select %8, %10, %11 : vector<32x32xi1>, vector<32x32xf32>
    %c0_4 = arith.constant 0 : index
    %c0_5 = arith.constant 0 : index
    %13 = vector.load %arg2[%c0_4, %c0_5] : memref<32x32xf32, #tpu.memory_space<vmem>>, vector<32x32xf32>
    tpu.vector_store %arg2[%c0_4, %c0_5], %12 {strides = array<i32>} : memref<32x32xf32, #tpu.memory_space<vmem>>, vector<32x32xf32>,
    %14 = math.log1p %4 : vector<32x32xf32>
    %cst_6 = arith.constant 2.000000e+00 : f32
    %15 = vector.broadcast %cst_6 : f32 to vector<32x32xf32>
    %16 = arith.mulf %15, %14 : vector<32x32xf32>
    %17 = arith.subf %3, %16 : vector<32x32xf32>
    %cst_7 = arith.constant dense<0.000000e+00> : vector<32xf32>
    %18 = vector.multi_reduction <add>, %17, %cst_7 [1] : vector<32x32xf32> to vector<32xf32>
    %19 = vector.shape_cast %18 : vector<32xf32> to vector<32x1xf32>
    %c0_8 = arith.constant 0 : index
    %c0_9 = arith.constant 0 : index
    %20 = vector.load %arg3[%c0_8, %c0_9] : memref<32x1xf32, #tpu.memory_space<vmem>>, vector<32x1xf32>
    tpu.vector_store %arg3[%c0_8, %c0_9], %19 {strides = array<i32>} : memref<32x1xf32, #tpu.memory_space<vmem>>, vector<32x1xf32>,
    return
  }
  func.func @transform_0(%arg0: i32) -> (i32, i32) {
    %c0_i32 = arith.constant 0 : i32
    %c0_i32_0 = arith.constant 0 : i32
    return %arg0, %c0_i32 : i32, i32
  }
  func.func @transform_1(%arg0: i32) -> (i32, i32) {
    %c0_i32 = arith.constant 0 : i32
    %c0_i32_0 = arith.constant 0 : i32
    return %arg0, %c0_i32 : i32, i32
  }
  func.func @transform_2(%arg0: i32) -> (i32, i32) {
    %c0_i32 = arith.constant 0 : i32
    %c0_i32_0 = arith.constant 0 : i32
    return %arg0, %c0_i32 : i32, i32
  }
}

</mosaic_0001>

<bundles_post_ra>
// kernel: tpu_custom_call.1
= control target key start
LH: loop header
LB: loop body
LE: loop exit
PB: predicated region body
PF: predicated region fallthrough
CT: control target
= control target key end

     0   :  { %s481_s9 = smov 0   ;;  %s684_s0 = inlined_call_operand.vmem [shape: f32[64,32], index: 0, kind: input, shape index: {}]   ;;  %s685_s1 = inlined_call_operand.vmem [shape: f32[64,32], index: 1, kind: output, shape index: {0}]   ;;  %s686_s2 = inlined_call_operand.vmem [shape: f32[64,1], index: 2, kind: output, shape index: {1}]  }
   0x1 LB: > { %s413_s10 = sadd.s32 4294967295, %s464_s9   ;;  %p417_p0 = scmp.ge.s32.totalorder %s464_s9, 1  ;;  %s464_s9 = sphi %s481_s9, %s13_s9  }
   0x2   : > { %p116_p1 = scmp.lt.s32.totalorder %s464_s9, 3 }
   0x4   : > { %p117_p2 = pnand %p417_p0, %p116_p1 }
   0x5   : > { %s418_s11 = sshll.u32 (!%p117_p2), %s413_s10, 2 }
   0x6   : > { %120 = sbr.rel (%p117_p2) target bundleno = 177 (0xb1), region = 24  ;;  %p144_p3 = scmp.lt.s32.totalorder (!%p117_p2), %s418_s11, 7 }
   0xb   : > { %s706_s11 = smov (!%p144_p3, %s418_s11), 7  ;;  %vm257_vm0 = vcmask 261120  }
   0xc   : > { %s489_s12 = sshll.u32 %s706_s11, 3 }
   0xd   : > { %s147_s15 = scalar_lea.vmem %s684_s0, %s489_s12  ;;  %s629_s18 = scalar_lea.vmem %s685_s1, %s489_s12 }
   0xe   : > { %v495_v0 = vld [vmem:[%s147_s15] sm:$0xff]  ;;  %v497_v1 = vld [vmem:[%s147_s15 + $0x10] sm:$0xff]  ;;  %v499_v2 = vld [vmem:[%s147_s15 + $0x8] sm:$0xff]  ;;  %s159_s21 = scalar_lea.vmem %s686_s2, %s489_s12 }
   0xf   : > { %v165_v3 = vand.u32 2147483647, %v495_v0  ;;  %v167_v4 = vand.u32 2147483647, %v497_v1  ;;  %v503_v5 = vld [vmem:[%s147_s15 + $0x18] sm:$0xff]  ;;  %vm185_vm8 = vcmp.ge.f32.partialorder %v495_v0, 0.0 }
  0x10   : > { %v166_v6 = vand.u32 2147483647, %v499_v2  ;;  %v168_v7 = vand.u32 2147483647, %v503_v5 }
  0x11   : > { %v507_v8 = vsub.f32 0.0, %v165_v3  ;;  %v509_v9 = vsub.f32 0.0, %v167_v4 }
  0x12   : > { %v511_v10 = vsub.f32 0.0, %v166_v6  ;;  %v515_v13 = vsub.f32 0.0, %v168_v7 }
  0x13   : > { %v173_v11 = vmul.f32 1.442695, %v507_v8  ;;  %v177_v12 = vmul.f32 1.442695, %v509_v9 }
  0x14   : > { %v175_v14 = vmul.f32 1.442695, %v511_v10  ;;  %v179_v15 = vmul.f32 1.442695, %v515_v13 }
  0x15   : > { %434 = vpow2.f32 %v173_v11 }
  0x16   : > { %436 = vpow2.f32 %v177_v12 }
  0x17   : > { %438 = vpow2.f32 %v175_v14 }
  0x18   : > { %440 = vpow2.f32 %v179_v15 }
  0x1b   : > { %v519_v16 = vpop.eup %434 }
  0x1c   : > { %v521_v17 = vpop.eup %436  ;;  %v524_v18 = vadd.f32 1.0, %v519_v16  ;;  %v265_v19 = vmul.f32 -0.5, %v519_v16  ;;  %v268_v20 = vand.u32 2147483647, %v519_v16 }
  0x1d   : > { %v529_v21 = vadd.f32 1.0, %v521_v17  ;;  %v283_v22 = vmul.f32 -0.5, %v521_v17  ;;  %v286_v24 = vand.u32 2147483647, %v521_v17  ;;  %v534_v25 = vpop.eup %438 }
  0x1e   : > { %442 = vlog2.f32 %v524_v18  ;;  %v266_v23 = vadd.f32 1.0, %v265_v19  ;;  %v200_v26 = vand.u32 2147483648, %v524_v18  ;;  %v198_v28 = vand.u32 2147483647, %v524_v18  ;;  %v540_v29 = vpop.eup %440 }
  0x1f   : > { %444 = vrcp.f32 %v524_v18  ;;  %v284_v27 = vadd.f32 1.0, %v283_v22  ;;  %vm543_vm1 = vcmp.lt.f32.partialorder %v268_v20, 0.0004427343  ;;  %vm194_vm2 = vweird.f32 %v524_v18 }
  0x20   : > { %446 = vlog2.f32 %v529_v21  ;;  %v267_v30 = vmul.f32 %v519_v16, %v266_v23  ;;  %vm549_vm3 = vcmp.lt.f32.partialorder %v286_v24, 0.0004427343  ;;  %v228_v33 = vand.u32 2147483647, %v529_v21 }
  0x21   : > { %448 = vrcp.f32 %v529_v21  ;;  %v230_v34 = vand.u32 2147483648, %v529_v21  ;;  %v556_v35 = vadd.f32 1.0, %v534_v25  ;;  %v201_v36 = vor.u32 1.1754944e-38, %v200_v26 }
  0x22   : > { %v285_v37 = vmul.f32 %v521_v17, %v284_v27  ;;  %vm224_vm4 = vweird.f32 %v529_v21  ;;  %v274_v38 = vmul.f32 -0.5, %v534_v25  ;;  %vm561_vm5 = vcmp.eq.f32.partialorder %v198_v28, 8.507059e+37 }
  0x23   : > { %450 = vrcp.f32 %v556_v35  ;;  %v277_v41 = vand.u32 2147483647, %v534_v25  ;;  %v568_v42 = vadd.f32 1.0, %v540_v29  ;;  %v292_v43 = vmul.f32 -0.5, %v540_v29 }
  0x24   : > { %v443_v39 = vpop.eup %442  ;;  %v213_v46 = vand.u32 2147483647, %v556_v35  ;;  %452 = vlog2.f32 %v556_v35  ;;  %v295_v47 = vand.u32 2147483647, %v540_v29  ;;  %vm575_vm6 = vcmp.eq.f32.partialorder %v228_v33, 8.507059e+37 }
  0x25   : > { %v445_v44 = vpop.eup %444  ;;  %v264_v45 = vmul.f32 0.6931472, %v443_v39  ;;  %v231_v51 = vor.u32 1.1754944e-38, %v230_v34  ;;  %vm209_vm7 = vweird.f32 %v556_v35  ;;  %v215_v52 = vand.u32 2147483648, %v556_v35 }
  0x26   : > { %v447_v48 = vpop.eup %446  ;;  %v190_v49 = vmul.f32 %v445_v44, %v524_v18  ;;  %vm195_vm9 = vweird.f32 %v445_v44  ;;  %v275_v56 = vadd.f32 1.0, %v274_v38  ;;  %vm585_vm10 = vcmp.lt.f32.partialorder %v277_v41, 0.0004427343 }
  0x27   : > { %v449_v53 = vpop.eup %448  ;;  %v270_v54 = vsel %vm543_vm1, %v267_v30, %v264_v45  ;;  %v282_v55 = vmul.f32 0.6931472, %v447_v48  ;;  %vm591_vm12 = vcmp.eq.f32.partialorder %v213_v46, 8.507059e+37  ;;  %454 = vrcp.f32 %v568_v42  ;;  %vm600_vm13 = vmor %vm194_vm2, %vm195_vm9 }
  0x28   : > { %v298_v57 = vmul.f32 2.0, %v270_v54  ;;  %v191_v58 = vsub.f32 1.0, %v190_v49  ;;  %v220_v59 = vmul.f32 %v449_v53, %v529_v21  ;;  %vm225_vm11 = vweird.f32 %v449_v53 }
  0x29   : > { %v288_v61 = vsel %vm549_vm3, %v285_v37, %v282_v55  ;;  %v451_v63 = vpop.eup %450  ;;  %v216_v15 = vor.u32 1.1754944e-38, %v215_v52  ;;  %v276_v19 = vmul.f32 %v534_v25, %v275_v56  ;;  %vm239_vm14 = vweird.f32 %v568_v42  ;;  %vm612_vm15 = vmor %vm224_vm4, %vm225_vm11 }
  0x2a   : > { %v302_v3 = vsub.f32 %v507_v8, %v298_v57  ;;  %v192_v4 = vmul.f32 %v445_v44, %v191_v58  ;;  %v300_v6 = vmul.f32 2.0, %v288_v61  ;;  %v221_v7 = vsub.f32 1.0, %v220_v59  ;;  %v453_v11 = vpop.eup %452 }
  0x2b   : > { %v205_v14 = vmul.f32 %v451_v63, %v556_v35  ;;  %vm210_vm1 = vweird.f32 %v451_v63  ;;  %v273_v26 = vmul.f32 0.6931472, %v453_v11  ;;  %v243_v27 = vand.u32 2147483647, %v568_v42 }
  0x2c   : > { %v306_v8 = vsel %vm257_vm0, %v302_v3, 0.0  ;;  %v193_v20 = vadd.f32 %v445_v44, %v192_v4  ;;  %v304_v22 = vsub.f32 %v509_v9, %v300_v6  ;;  %v222_v23 = vmul.f32 %v449_v53, %v221_v7  ;;  %vm637_vm2 = vmor %vm209_vm7, %vm210_vm1 }
  0x2d   : > { %307 = vadd.xlane.f32.xlu0 %v306_v8  ;;  %v206_v24 = vsub.f32 1.0, %v205_v14  ;;  %456 = vlog2.f32 %v568_v42  ;;  %v455_v31 = vpop.eup %454  ;;  %v279_v33 = vsel %vm585_vm10, %v276_v19, %v273_v26  ;;  %v293_v34 = vadd.f32 1.0, %v292_v43 }
  0x2e   : > { %v197_v28 = vsel %vm600_vm13, %v445_v44, %v193_v20  ;;  %v312_v9 = vsel %vm257_vm0, %v304_v22, 0.0  ;;  %v223_v30 = vadd.f32 %v449_v53, %v222_v23  ;;  %v299_v39 = vmul.f32 2.0, %v279_v33 }
  0x2f   : > { %v202_v21 = vsel %vm561_vm5, %v201_v36, %v197_v28  ;;  %313 = vadd.xlane.f32.xlu1 %v312_v9  ;;  %v207_v32 = vmul.f32 %v451_v63, %v206_v24  ;;  %v235_v40 = vmul.f32 %v455_v31, %v568_v42  ;;  %vm240_vm3 = vweird.f32 %v455_v31 }
  0x30   : > { %v249_v37 = vmul.f32 %v519_v16, %v202_v21  ;;  %v227_v38 = vsel %vm612_vm15, %v449_v53, %v223_v30  ;;  %v245_v16 = vand.u32 2147483648, %v568_v42  ;;  %v303_v35 = vsub.f32 %v511_v10, %v299_v39  ;;  %vm241_vm7 = vmor %vm239_vm14, %vm240_vm3 }
  0x31   : > { %v232_v41 = vsel %vm575_vm6, %v231_v51, %v227_v38  ;;  %v208_v43 = vadd.f32 %v451_v63, %v207_v32  ;;  %v236_v46 = vsub.f32 1.0, %v235_v40  ;;  %vm187_vm4 = vcmp.ge.f32.partialorder %v497_v1, 0.0 }
  0x32   : > { %v253_v44 = vsel %vm185_vm8, %v202_v21, %v249_v37  ;;  %v251_v45 = vmul.f32 %v521_v17, %v232_v41  ;;  %vm186_vm5 = vcmp.ge.f32.partialorder %v499_v2, 0.0  ;;  %v294_v49 = vmul.f32 %v540_v29, %v293_v34 }
  0x33   : > { %258 = vst.msk [vmem:[%s629_s18] sm:$0xff] %vm257_vm0, %v253_v44  ;;  %v212_v48 = vsel %vm637_vm2, %v451_v63, %v208_v43  ;;  %v457_v50 = vpop.eup %456  ;;  %v309_v17 = vsel %vm257_vm0, %v303_v35, 0.0  ;;  %v237_v10 = vmul.f32 %v455_v31, %v236_v46  ;;  %vm296_vm6 = vcmp.lt.f32.partialorder %v295_v47, 0.0004427343 }
  0x34   : > { %v217_v0 = vsel %vm591_vm12, %v216_v15, %v212_v48  ;;  %v246_v51 = vor.u32 1.1754944e-38, %v245_v16  ;;  %v291_v52 = vmul.f32 0.6931472, %v457_v50  ;;  %v255_v53 = vsel %vm187_vm4, %v232_v41, %v251_v45 }
  0x35   : > { %v250_v1 = vmul.f32 %v534_v25, %v217_v0  ;;  %310 = vadd.xlane.f32.xlu0 %v309_v17  ;;  %v238_v54 = vadd.f32 %v455_v31, %v237_v10  ;;  %vm244_vm8 = vcmp.eq.f32.partialorder %v243_v27, 8.507059e+37  ;;  %260 = vst.msk [vmem:[%s629_s18 + $0x10] sm:$0xff] %vm257_vm0, %v255_v53  ;;  %vm188_vm9 = vcmp.ge.f32.partialorder %v503_v5, 0.0 }
  0x36   : > { %v297_v56 = vsel %vm296_vm6, %v294_v49, %v291_v52  ;;  %vm318_vm10 = vcmask 7168  }
  0x37   : > { %v254_v55 = vsel %vm186_vm5, %v217_v0, %v250_v1  ;;  %v242_v47 = vsel %vm241_vm7, %v455_v31, %v238_v54  ;;  %v301_v25 = vmul.f32 2.0, %v297_v56 }
  0x38   : > { %259 = vst.msk [vmem:[%s629_s18 + $0x8] sm:$0xff] %vm257_vm0, %v254_v55  ;;  %v247_v42 = vsel %vm244_vm8, %v246_v51, %v242_v47 }
  0x39   : > { %v252_v57 = vmul.f32 %v540_v29, %v247_v42  ;;  %v305_v58 = vsub.f32 %v515_v13, %v301_v25 }
  0x3b   : > { %v256_v59 = vsel %vm188_vm9, %v247_v42, %v252_v57  ;;  %v315_v60 = vsel %vm257_vm0, %v305_v58, 0.0 }
  0x3c   : > { %316 = vadd.xlane.f32.xlu1 %v315_v60  ;;  %261 = vst.msk [vmem:[%s629_s18 + $0x18] sm:$0xff] %vm257_vm0, %v256_v59 }
  0xa0   : > { %v308_v2 = vpop.xlane.xlu0 %307 }
  0xa1   : > { %319 = vst.msk [vmem:[%s159_s21] sm:$0xff] %vm318_vm10, %v308_v2 }
  0xa2   : > { %v314_v61 = vpop.xlane.xlu1 %313 }
  0xa3   : > { %321 = vst.msk [vmem:[%s159_s21 + $0x10] sm:$0xff] %vm318_vm10, %v314_v61 }
  0xa8   : > { %v311_v5 = vpop.xlane.xlu0 %310 }
  0xa9   : > { %320 = vst.msk [vmem:[%s159_s21 + $0x8] sm:$0xff] %vm318_vm10, %v311_v5 }
  0xaf   : > { %v317_v29 = vpop.xlane.xlu1 %316 }
  0xb0   : > { %322 = vst.msk [vmem:[%s159_s21 + $0x18] sm:$0xff] %vm318_vm10, %v317_v29 }
  0xb1 PF: > { %s13_s9 = sadd.s32 1, %s464_s9  }
  0xb2   : > { %p10_p4 = scmp.ge.s32.totalorder %s13_s9, 4  }
  0xb4   :  { %12 = sbr.rel (!%p10_p4) target bundleno = 1 (0x1), region = 66 }

</bundles_post_ra>
